<compile_context>
chip_gen: v6e
topology: v6e:2x2x1
jax: 0.10.0
libtpu: 0.0.40
codegen_flags: <defaults>
</compile_context>

<pallas_src>
import jax
import jax.numpy as jnp
from jax import lax
from jax.experimental import pallas as pl
from jax.experimental.pallas import tpu as pltpu


def _make_kernel(action_size, matmul_dtype):
    A = action_size

    def kernel(x_ref, w1_ref, b1_ref, w2_ref, b2_ref, whT_ref, bhT_ref, out_ref):
        # shared trunk: Linear -> ReLU -> Linear -> ReLU  (MXU in matmul_dtype,
        # f32 accumulation; all elementwise math stays f32)
        x = x_ref[...].astype(matmul_dtype)
        h1 = jnp.dot(x, w1_ref[...], preferred_element_type=jnp.float32)
        h1 = jnp.maximum(h1 + b1_ref[...], 0.0)
        h2 = jnp.dot(h1.astype(matmul_dtype), w2_ref[...],
                     preferred_element_type=jnp.float32)
        h2 = jnp.maximum(h2 + b2_ref[...], 0.0)

        # fused heads, head-major:  z[r, b] = sum_h whT[r, h] * h2[b, h]
        #   rows [0:A)   -> actor mean (tanh)
        #   rows [A:2A)  -> actor std  (softplus + 0.001)
        #   row   2A     -> critic value (identity)
        #   rest         -> zero padding
        z = lax.dot_general(
            whT_ref[...], h2.astype(matmul_dtype),
            dimension_numbers=(((1,), (1,)), ((), ())),
            preferred_element_type=jnp.float32)
        z = z + bhT_ref[...]

        row = lax.broadcasted_iota(jnp.int32, z.shape, 0)
        mean = jnp.tanh(z)
        std = jnp.logaddexp(z, 0.0) + 0.001          # softplus(z) + 0.001
        out_ref[...] = jnp.where(row < A, mean,
                                 jnp.where(row < 2 * A, std, z))

    return kernel


def prepare_params(params, *, matmul_dtype=jnp.bfloat16):
    """One-time setup: fuse + pad the three heads (head-major) and cast the
    matmul operands.  Hoisted out of the per-step forward."""
    S, H = params["w1"].shape
    A = params["wm"].shape[1]
    head_rows = max(8, 8 * pl.cdiv(2 * A + 1, 8))     # sublane-padded head rows

    whT = jnp.zeros((head_rows, H), jnp.float32)
    whT = (whT.at[:A].set(params["wm"].T)
              .at[A:2 * A].set(params["ws"].T)
              .at[2 * A:2 * A + 1].set(params["wc"].T))
    bhT = jnp.zeros((head_rows, 1), jnp.float32)
    bhT = (bhT.at[:A, 0].set(params["bm"][0])
              .at[A:2 * A, 0].set(params["bs"][0])
              .at[2 * A, 0].set(params["bc"][0, 0]))

    return dict(
        w1=params["w1"].astype(matmul_dtype), b1=params["b1"],
        w2=params["w2"].astype(matmul_dtype), b2=params["b2"],
        whT=whT.astype(matmul_dtype), bhT=bhT,
        A=A, S=S, H=H, head_rows=head_rows, matmul_dtype=matmul_dtype,
    )


def actor_critic_forward(x, prep, *, tb=None):
    """x: [B, state_size] f32.  prep: output of prepare_params().

    Returns (action_mean [B, A], action_std [B, A], state_value [B, 1]), f32.
    """
    B, S = x.shape
    A, H, head_rows = prep["A"], prep["H"], prep["head_rows"]
    mdt = prep["matmul_dtype"]
    assert S == prep["S"], "state_size mismatch"

    w1, b1 = prep["w1"], prep["b1"]
    w2, b2 = prep["w2"], prep["b2"]
    whT, bhT = prep["whT"], prep["bhT"]

    # ---- batch tiling ----
    if tb is None:
        if B <= 256:
            tb = max(8, 8 * pl.cdiv(B, 8))                       # one small padded tile
        else:
            # >=2 grid steps (v7x megacore gets both TCs busy); rows capped at 2048
            tb = min(2048, 128 * pl.cdiv(pl.cdiv(B, 2), 128))
    # multi-tile output puts batch on the lane axis -> tile must be a 128-multiple
    if B > tb and tb % 128 != 0:
        tb = 128 * pl.cdiv(tb, 128)
    Bp = tb * pl.cdiv(B, tb)
    if Bp != B:
        x = jnp.pad(x, ((0, Bp - B), (0, 0)))
    grid = (Bp // tb,)

    const = lambda arr: pl.BlockSpec(arr.shape, lambda i: (0, 0))
    in_specs = [
        pl.BlockSpec((tb, S), lambda i: (i, 0)),   # x: streamed per batch tile
        const(w1), const(b1),                      # weights/biases: VMEM-resident
        const(w2), const(b2),
        const(whT), const(bhT),
    ]
    out_spec = pl.BlockSpec((head_rows, tb), lambda i: (0, i))   # head-major slab

    # ---- VMEM budget (constant-index inputs still get 2 buffers; sized for
    #      v7x's 64 MiB physical / 32 MiB default-scoped per TC) ----
    msz = jnp.dtype(mdt).itemsize
    wbytes = ((w1.size + w2.size + whT.size) * msz
              + (b1.size + b2.size + bhT.size) * 4)
    vmem_need = (2 * tb * S * 4               # double-buffered x
                 + 2 * head_rows * tb * 4     # double-buffered output
                 + 2 * wbytes                 # resident weights (x2 buffers)
                 + 6 * tb * H * 4)            # h1/h2 + casts + temporaries
    vmem_limit = int(min(max(2 * vmem_need, 8 << 20), 48 << 20))

    flops = 2 * Bp * (S * H + H * H + H * head_rows)
    transcendentals = 3 * Bp * head_rows       # tanh + exp + log1p on the head slab
    bytes_accessed = Bp * S * 4 + wbytes + head_rows * Bp * 4
    cost = pl.CostEstimate(flops=flops, transcendentals=transcendentals,
                           bytes_accessed=bytes_accessed)

    out = pl.pallas_call(
        _make_kernel(A, mdt),
        out_shape=jax.ShapeDtypeStruct((head_rows, Bp), jnp.float32),
        grid=grid,
        in_specs=in_specs,
        out_specs=out_spec,
        compiler_params=pltpu.CompilerParams(
            dimension_semantics=("parallel",),     # megacore sharding on v7x
            vmem_limit_bytes=vmem_limit),
        cost_estimate=cost,
    )(x, w1, b1, w2, b2, whT, bhT)

    mean = out[:A, :B].T
    std = out[A:2 * A, :B].T
    value = out[2 * A:2 * A + 1, :B].T
    return mean, std, value


def init_params(key, state_size, action_size, hidden_size):
    """Deterministic synthetic init.  Weights stored as [in, out]."""
    ks = jax.random.split(key, 10)

    def lin(kw, kb, fan_in, fan_out):
        scale = 1.0 / jnp.sqrt(jnp.float32(fan_in))
        w = jax.random.uniform(kw, (fan_in, fan_out), jnp.float32, -scale, scale)
        b = jax.random.uniform(kb, (1, fan_out), jnp.float32, -scale, scale)
        return w, b

    w1, b1 = lin(ks[0], ks[1], state_size, hidden_size)
    w2, b2 = lin(ks[2], ks[3], hidden_size, hidden_size)
    wm, bm = lin(ks[4], ks[5], hidden_size, action_size)
    ws, bs = lin(ks[6], ks[7], hidden_size, action_size)
    wc, bc = lin(ks[8], ks[9], hidden_size, 1)
    return dict(w1=w1, b1=b1, w2=w2, b2=b2,
                wm=wm, bm=bm, ws=ws, bs=bs, wc=wc, bc=bc)


def reference_forward(x, p):
    """Pure-JAX reference matching the PyTorch forward."""
    h = jnp.maximum(x @ p["w1"] + p["b1"], 0.0)
    h = jnp.maximum(h @ p["w2"] + p["b2"], 0.0)
    mean = jnp.tanh(h @ p["wm"] + p["bm"])
    std = jax.nn.softplus(h @ p["ws"] + p["bs"]) + 0.001
    value = h @ p["wc"] + p["bc"]
    return mean, std, value


if __name__ == "__main__":
    B = 8            # batch
    STATE = 16       # state_size
    ACTION = 4       # action_size
    HIDDEN = 32      # hidden_size (small-shape stand-in for 256)

    key = jax.random.PRNGKey(0)
    kx, kp = jax.random.split(key)
    x = jax.random.normal(kx, (B, STATE), jnp.float32)
    params = init_params(kp, STATE, ACTION, HIDDEN)
    r_mean, r_std, r_value = reference_forward(x, params)

    # ---- f32 matmul operands (tight tolerance) ----
    prep_f32 = prepare_params(params, matmul_dtype=jnp.float32)
    mean, std, value = actor_critic_forward(x, prep_f32)
    jax.block_until_ready((mean, std, value))
    assert mean.shape == (B, ACTION) and std.shape == (B, ACTION) and value.shape == (B, 1)
    assert jnp.allclose(mean, r_mean, atol=1e-4), "mean mismatch (f32)"
    assert jnp.allclose(std, r_std, atol=1e-4), "std mismatch (f32)"
    assert jnp.allclose(value, r_value, atol=1e-4), "value mismatch (f32)"

    # ---- default path: bf16 MXU operands, f32 accumulation ----
    prep_bf16 = prepare_params(params)           # matmul_dtype defaults to bf16
    mean_b, std_b, value_b = actor_critic_forward(x, prep_bf16)
    jax.block_until_ready((mean_b, std_b, value_b))
    assert jnp.allclose(mean_b, r_mean, atol=5e-2, rtol=5e-2), "mean mismatch (bf16)"
    assert jnp.allclose(std_b, r_std, atol=5e-2, rtol=5e-2), "std mismatch (bf16)"
    assert jnp.allclose(value_b, r_value, atol=5e-2, rtol=5e-2), "value mismatch (bf16)"

    # ---- multi-step grid: lane-dense 128-row tiles over B=384 (grid=(3,)) ----
    B2 = 384
    x2 = jax.random.normal(jax.random.PRNGKey(1), (B2, STATE), jnp.float32)
    m2, s2, v2 = actor_critic_forward(x2, prep_f32, tb=128)
    jax.block_until_ready((m2, s2, v2))
    rm2, rs2, rv2 = reference_forward(x2, params)
    assert m2.shape == (B2, ACTION) and s2.shape == (B2, ACTION) and v2.shape == (B2, 1)
    assert jnp.allclose(m2, rm2, atol=1e-4), "mean mismatch (grid)"
    assert jnp.allclose(s2, rs2, atol=1e-4), "std mismatch (grid)"
    assert jnp.allclose(v2, rv2, atol=1e-4), "value mismatch (grid)"

    print("KERNEL_OK")
</pallas_src>

<mosaic_0001>
module attributes {stable_mosaic.version = 11 : i64} {
  func.func @kernel(%arg0: i32, %arg1: memref<8x16xf32, #tpu.memory_space<vmem>>, %arg2: memref<16x32xf32, #tpu.memory_space<vmem>>, %arg3: memref<1x32xf32, #tpu.memory_space<vmem>>, %arg4: memref<32x32xf32, #tpu.memory_space<vmem>>, %arg5: memref<1x32xf32, #tpu.memory_space<vmem>>, %arg6: memref<16x32xf32, #tpu.memory_space<vmem>>, %arg7: memref<16x1xf32, #tpu.memory_space<vmem>>, %arg8: memref<16x8xf32, #tpu.memory_space<vmem>>) attributes {dimension_semantics = [#tpu.dimension_semantics<parallel>], iteration_bounds = array<i64: 1>, scalar_prefetch = 0 : i64, scratch_operands = 0 : i64, tpu.core_type = #tpu.core_type<tc>, window_params = [{transform_indices = @transform_0, window_bounds = array<i64: 8, 16>}, {pipeline_mode = #tpu.pipeline_mode<synchronous>, transform_indices = @transform_1, window_bounds = array<i64: 16, 32>}, {pipeline_mode = #tpu.pipeline_mode<synchronous>, transform_indices = @transform_2, window_bounds = array<i64: 1, 32>}, {pipeline_mode = #tpu.pipeline_mode<synchronous>, transform_indices = @transform_3, window_bounds = array<i64: 32, 32>}, {pipeline_mode = #tpu.pipeline_mode<synchronous>, transform_indices = @transform_4, window_bounds = array<i64: 1, 32>}, {pipeline_mode = #tpu.pipeline_mode<synchronous>, transform_indices = @transform_5, window_bounds = array<i64: 16, 32>}, {pipeline_mode = #tpu.pipeline_mode<synchronous>, transform_indices = @transform_6, window_bounds = array<i64: 16, 1>}, {transform_indices = @transform_7, window_bounds = array<i64: 16, 8>}]} {
    %c0 = arith.constant 0 : index
    %c0_0 = arith.constant 0 : index
    %0 = vector.load %arg1[%c0, %c0_0] : memref<8x16xf32, #tpu.memory_space<vmem>>, vector<8x16xf32>
    %c0_1 = arith.constant 0 : index
    %c0_2 = arith.constant 0 : index
    %1 = vector.load %arg2[%c0_1, %c0_2] : memref<16x32xf32, #tpu.memory_space<vmem>>, vector<16x32xf32>
    %cst = arith.constant dense<0.000000e+00> : vector<8x32xf32>
    %2 = tpu.matmul %0, %1, %cst {dimension_numbers = #tpu.dot_dimension_numbers<[1], [0], [0], [1], [0, 0, 1, 1], [], []>} : vector<8x16xf32>, vector<16x32xf32>, vector<8x32xf32> -> vector<8x32xf32>
    %c0_3 = arith.constant 0 : index
    %c0_4 = arith.constant 0 : index
    %3 = vector.load %arg3[%c0_3, %c0_4] : memref<1x32xf32, #tpu.memory_space<vmem>>, vector<1x32xf32>
    %4 = vector.broadcast %3 : vector<1x32xf32> to vector<8x32xf32>
    %5 = arith.addf %2, %4 : vector<8x32xf32>
    %cst_5 = arith.constant 0.000000e+00 : f32
    %6 = vector.broadcast %cst_5 : f32 to vector<8x32xf32>
    %7 = arith.maximumf %5, %6 : vector<8x32xf32>
    %c0_6 = arith.constant 0 : index
    %c0_7 = arith.constant 0 : index
    %8 = vector.load %arg4[%c0_6, %c0_7] : memref<32x32xf32, #tpu.memory_space<vmem>>, vector<32x32xf32>
    %cst_8 = arith.constant dense<0.000000e+00> : vector<8x32xf32>
    %9 = tpu.matmul %7, %8, %cst_8 {dimension_numbers = #tpu.dot_dimension_numbers<[1], [0], [0], [1], [0, 0, 1, 1], [], []>} : vector<8x32xf32>, vector<32x32xf32>, vector<8x32xf32> -> vector<8x32xf32>
    %c0_9 = arith.constant 0 : index
    %c0_10 = arith.constant 0 : index
    %10 = vector.load %arg5[%c0_9, %c0_10] : memref<1x32xf32, #tpu.memory_space<vmem>>, vector<1x32xf32>
    %11 = vector.broadcast %10 : vector<1x32xf32> to vector<8x32xf32>
    %12 = arith.addf %9, %11 : vector<8x32xf32>
    %cst_11 = arith.constant 0.000000e+00 : f32
    %13 = vector.broadcast %cst_11 : f32 to vector<8x32xf32>
    %14 = arith.maximumf %12, %13 : vector<8x32xf32>
    %c0_12 = arith.constant 0 : index
    %c0_13 = arith.constant 0 : index
    %15 = vector.load %arg6[%c0_12, %c0_13] : memref<16x32xf32, #tpu.memory_space<vmem>>, vector<16x32xf32>
    %cst_14 = arith.constant dense<0.000000e+00> : vector<16x8xf32>
    %16 = tpu.matmul %15, %14, %cst_14 {dimension_numbers = #tpu.dot_dimension_numbers<[1], [1], [0], [0], [0, 0, 1, 0], [], []>} : vector<16x32xf32>, vector<8x32xf32>, vector<16x8xf32> -> vector<16x8xf32>
    %c0_15 = arith.constant 0 : index
    %c0_16 = arith.constant 0 : index
    %17 = vector.load %arg7[%c0_15, %c0_16] : memref<16x1xf32, #tpu.memory_space<vmem>>, vector<16x1xf32>
    %18 = vector.broadcast %17 : vector<16x1xf32> to vector<16x8xf32>
    %19 = arith.addf %16, %18 : vector<16x8xf32>
    %20 = tpu.iota {dimensions = array<i32: 0>} : vector<16x8xi32>
    %21 = math.tanh %19 : vector<16x8xf32>
    %cst_17 = arith.constant 0.000000e+00 : f32
    %22 = vector.broadcast %cst_17 : f32 to vector<16x8xf32>
    %23 = arith.maximumf %19, %22 : vector<16x8xf32>
    %24 = vector.broadcast %cst_17 : f32 to vector<16x8xf32>
    %25 = arith.subf %19, %24 : vector<16x8xf32>
    %26 = arith.cmpf one, %25, %25 : vector<16x8xf32>
    %27 = vector.broadcast %cst_17 : f32 to vector<16x8xf32>
    %28 = arith.addf %19, %27 : vector<16x8xf32>
    %29 = math.absf %25 : vector<16x8xf32>
    %cst_18 = arith.constant 0.000000e+00 : f32
    %30 = vector.broadcast %cst_18 : f32 to vector<16x8xf32>
    %31 = arith.subf %30, %29 : vector<16x8xf32>
    %32 = math.exp %31 : vector<16x8xf32>
    %33 = math.log1p %32 : vector<16x8xf32>
    %34 = arith.addf %23, %33 : vector<16x8xf32>
    %35 = arith.select %26, %28, %34 : vector<16x8xi1>, vector<16x8xf32>
    %cst_19 = arith.constant 1.000000e-03 : f32
    %36 = vector.broadcast %cst_19 : f32 to vector<16x8xf32>
    %37 = arith.addf %35, %36 : vector<16x8xf32>
    %c4_i32 = arith.constant 4 : i32
    %38 = vector.broadcast %c4_i32 : i32 to vector<16x8xi32>
    %39 = arith.cmpi slt, %20, %38 : vector<16x8xi32>
    %c8_i32 = arith.constant 8 : i32
    %40 = vector.broadcast %c8_i32 : i32 to vector<16x8xi32>
    %41 = arith.cmpi slt, %20, %40 : vector<16x8xi32>
    %42 = arith.select %41, %37, %19 : vector<16x8xi1>, vector<16x8xf32>
    %43 = arith.select %39, %21, %42 : vector<16x8xi1>, vector<16x8xf32>
    %c0_20 = arith.constant 0 : index
    %c0_21 = arith.constant 0 : index
    %44 = vector.load %arg8[%c0_20, %c0_21] : memref<16x8xf32, #tpu.memory_space<vmem>>, vector<16x8xf32>
    tpu.vector_store %arg8[%c0_20, %c0_21], %43 {strides = array<i32>} : memref<16x8xf32, #tpu.memory_space<vmem>>, vector<16x8xf32>,
    return
  }
  func.func @transform_0(%arg0: i32) -> (i32, i32) {
    %c0_i32 = arith.constant 0 : i32
    %c0_i32_0 = arith.constant 0 : i32
    return %arg0, %c0_i32 : i32, i32
  }
  func.func @transform_1(%arg0: i32) -> (i32, i32) {
    %c0_i32 = arith.constant 0 : i32
    %c0_i32_0 = arith.constant 0 : i32
    %c0_i32_1 = arith.constant 0 : i32
    return %c0_i32, %c0_i32_0 : i32, i32
  }
  func.func @transform_2(%arg0: i32) -> (i32, i32) {
    %c0_i32 = arith.constant 0 : i32
    %c0_i32_0 = arith.constant 0 : i32
    %c0_i32_1 = arith.constant 0 : i32
    return %c0_i32, %c0_i32_0 : i32, i32
  }
  func.func @transform_3(%arg0: i32) -> (i32, i32) {
    %c0_i32 = arith.constant 0 : i32
    %c0_i32_0 = arith.constant 0 : i32
    %c0_i32_1 = arith.constant 0 : i32
    return %c0_i32, %c0_i32_0 : i32, i32
  }
  func.func @transform_4(%arg0: i32) -> (i32, i32) {
    %c0_i32 = arith.constant 0 : i32
    %c0_i32_0 = arith.constant 0 : i32
    %c0_i32_1 = arith.constant 0 : i32
    return %c0_i32, %c0_i32_0 : i32, i32
  }
  func.func @transform_5(%arg0: i32) -> (i32, i32) {
    %c0_i32 = arith.constant 0 : i32
    %c0_i32_0 = arith.constant 0 : i32
    %c0_i32_1 = arith.constant 0 : i32
    return %c0_i32, %c0_i32_0 : i32, i32
  }
  func.func @transform_6(%arg0: i32) -> (i32, i32) {
    %c0_i32 = arith.constant 0 : i32
    %c0_i32_0 = arith.constant 0 : i32
    %c0_i32_1 = arith.constant 0 : i32
    return %c0_i32, %c0_i32_0 : i32, i32
  }
  func.func @transform_7(%arg0: i32) -> (i32, i32) {
    %c0_i32 = arith.constant 0 : i32
    %c0_i32_0 = arith.constant 0 : i32
    return %c0_i32, %arg0 : i32, i32
  }
}

</mosaic_0001>

<bundles_post_ra>
// kernel: tpu_custom_call.1
= control target key start
LH: loop header
LB: loop body
LE: loop exit
PB: predicated region body
PF: predicated region fallthrough
CT: control target
= control target key end

     0   :  { %12 = vsyncpa [#allocation3], 0  ;;  %s602_s0 = inlined_call_operand.hbm [shape: f32[8,16], index: 0, kind: input, shape index: {}]   ;;  %s603_s1 = inlined_call_operand.vmem [shape: f32[16,32], index: 1, kind: input, shape index: {}]   ;;  %s604_s2 = inlined_call_operand.vmem [shape: f32[1,32], index: 2, kind: input, shape index: {}]   ;;  %s605_s3 = inlined_call_operand.hbm [shape: f32[32,32], index: 3, kind: input, shape index: {}]   ;;  %s606_s4 = inlined_call_operand.vmem [shape: f32[1,32], index: 4, kind: input, shape index: {}]   ;;  %s607_s5 = inlined_call_operand.hbm [shape: f32[16,32], index: 5, kind: input, shape index: {}]   ;;  %s608_s6 = inlined_call_operand.vmem [shape: f32[16,1], index: 6, kind: input, shape index: {}]   ;;  %s609_s7 = inlined_call_operand.vmem [shape: f32[16,8], index: 7, kind: output, shape index: {}]  }
   0x1   :  { %13 = vsyncpa [#allocation5], 0  ;;  %s514_s24 = smov [#allocation4]  }
   0x2   :  { %s33_s25 = sshll.u32 %s514_s24, 4  ;;  %s34_s25 = int_to_ptr.vmem [resolvable:$true] %s33_s25 }
   0x3   :  { %s458_s26 = scalar_lea.vmem %s34_s25, 512  ;;  %p463_p1 = scmp.lt.s32.totalorder %s34_s25, %s34_s25 }
   0x4   :  { %p459_p0 = scmp.ne.s32.totalorder %s34_s25, %s458_s26  ;;  %p464_p2 = scmp.lt.s32.totalorder %s458_s26, %s458_s26 }
   0x6   :  { %p465_p3 = por %p464_p2, %p463_p1 }
   0x8   :  { %p466_p4 = pnand %p465_p3, %p459_p0 }
   0xa   :  { %469 = shalt.err (!%p466_p4)
}
   0xb   :  { %s515_s27 = smov 128   ;;  %s516_s28 = smov 8  }
   0xc   :  { %39 = dma.hbm_to_vmem [thread:$0]  %s605_s3, 512, %s34_s25, [#allocation5], %s515_s27, %s515_s27, %s516_s28  }
   0xd   :  { %s517_s8 = smov [#allocation2]   ;;  %s518_s10 = smov [#allocation6]  }
   0xe   :  { %s20_s9 = sshll.u32 %s517_s8, 4  ;;  %s47_s11 = sshll.u32 %s518_s10, 4  ;;  %s21_s9 = int_to_ptr.vmem [resolvable:$true] %s20_s9  ;;  %s48_s11 = int_to_ptr.vmem [resolvable:$true] %s47_s11 }
   0xf   :  { %s478_s12 = scalar_lea.vmem %s21_s9, 128  ;;  %p483_p6 = scmp.lt.s32.totalorder %s21_s9, %s21_s9 }
  0x10   :  { %p479_p5 = scmp.ne.s32.totalorder %s21_s9, %s478_s12  ;;  %p484_p7 = scmp.lt.s32.totalorder %s478_s12, %s478_s12 }
  0x12   :  { %p485_p8 = por %p484_p7, %p483_p6 }
  0x14   :  { %p486_p9 = pnand %p485_p8, %p479_p5 }
  0x16   :  { %489 = shalt.err (!%p486_p9)
}
  0x17   :  { %23 = dma.hbm_to_vmem [thread:$0]  %s602_s0, 128, %s21_s9, [#allocation3]  }
  0x18   :  { %s498_s15 = scalar_lea.vmem %s48_s11, 256  ;;  %p503_p11 = scmp.lt.s32.totalorder %s48_s11, %s48_s11 }
  0x19   :  { %p499_p10 = scmp.ne.s32.totalorder %s48_s11, %s498_s15  ;;  %p504_p12 = scmp.lt.s32.totalorder %s498_s15, %s498_s15 }
  0x1b   :  { %p505_p13 = por %p504_p12, %p503_p11 }
  0x1d   :  { %p506_p0 = pnand %p505_p13, %p499_p10 }
  0x1f   :  { %509 = shalt.err (!%p506_p0)
}
  0x20   :  { %53 = dma.hbm_to_vmem [thread:$0]  %s607_s5, 256, %s48_s11, [#allocation5], %s515_s27, %s515_s27, %s516_s28  }
  0x21   :  { %510 = dma.done.wait [#allocation3], 128  }
  0x22   :  { %511 = vsyncadd [#allocation3], 4294967168 }
  0x23   :  { %512 = dma.done.wait [#allocation5], 768  }
  0x24   :  { %513 = vsyncadd [#allocation5], 4294966528  ;;  %v519_v0 = vmov 0.0   ;;  %vm520_vm0 = vmmov 0   ;;  %v67_v1 = vld [vmem:[%s603_s1 + $0x8] sm:$0xff]  ;;  %v66_v2 = vld [vmem:[%s603_s1] sm:$0xff]  ;;  %v334_v36 = vlaneseq }
  0x25   :  { %412 = vmatprep.subr.mxu0 %v519_v0  ;;  %416 = vmatprep.mubr.msk.f32.mxu0 %vm520_vm0, %v519_v0  ;;  %v65_v3 = vld [vmem:[#allocation2] sm:$0xff]  ;;  %vm75_vm1 = vcmask 130048   ;;  %v152_v5 = vld [vmem:[#allocation4 + $0x10] sm:$0xff]  ;;  %v151_v6 = vld [vmem:[#allocation4 + $0x8] sm:$0xff]  ;;  %vm161_vm2 = vcmask 261120   ;;  %v521_v15 = vmov 0  }
  0x26   :  { %419 = vmatprep.subr.mxu1 %v519_v0  ;;  %427 = vmatprep.mubr.msk.f32.mxu1 %vm520_vm0, %v519_v0  ;;  %v153_v4 = vld [vmem:[#allocation4 + $0x18] sm:$0xff]  ;;  %v150_v7 = vld [vmem:[#allocation4] sm:$0xff]  ;;  %v237_v22 = vld [vmem:[#allocation6 + $0x8] sm:$0xff]  ;;  %vm385_vm3 = vcmask 64512   ;;  %v335_v41 = vshrl.u32 %v334_v36, 7 }
  0x27   :  { %413 = vmatpush3.msra.mxu0 %v67_v1  ;;  %420 = vmatpush3.msra.mxu1 %v153_v4  ;;  %v394_v8 = vld [vmem:[%s604_s2] ss:$0 sm:$0xff]  ;;  %v236_v13 = vld [vmem:[#allocation6] sm:$0xff] }
  0x28   :  { %414 = vmatprep.subr.mxu0 %v519_v0  ;;  %421 = vmatprep.subr.mxu1 %v519_v0  ;;  %v238_v14 = vld [vmem:[%s608_s6] sm:$0xff]  ;;  %v239_v16 = vld [vmem:[%s608_s6 + $0x8] sm:$0xff]  ;;  %vm377_vm6 = vcmp.lt.s32.totalorder %v335_v41, 4 }
  0x29   :  { %415 = vmatpush3.msra.mxu0 %v66_v2  ;;  %422 = vmatpush3.msra.mxu1 %v152_v5  ;;  %v396_v17 = vld [vmem:[%s606_s4] ss:$0 sm:$0xff] }
  0x2a   :  { %417 = vmatmul.mubr.msk.f32.vlgmr.msra.gmra.mxu0 %vm75_vm1, %v65_v3  ;;  %423 = vmatprep.subr.mxu1 %v519_v0 }
  0x2b   :  { %424 = vmatpush3.msra.mxu1 %v151_v6  ;;  %432 = vmatprep.mubr.msk.f32.mxu0 %vm161_vm2, %v236_v13 }
  0x2c   :  { %425 = vmatprep.subr.mxu1 %v519_v0  ;;  %443 = vset.pattern.permute.xlu0 %v521_v15 }
  0x2d   :  { %426 = vmatpush3.msra.mxu1 %v150_v7  ;;  %242 = vperm.xlu0 %443, %v238_v14  }
  0x31   :  { %247 = vperm.xlu0 %443, %v239_v16  }
  0xa8   :  { %v243_v23 = vpop.permute.xlu0 %242 }
  0xac   :  { %v248_v24 = vpop.permute.xlu0 %247 }
  0xea   :  { %v145_v9 = vpop.f32.mrf.mxu0 }
  0xeb   :  { %v146_v10 = vadd.f32 %v394_v8, %v145_v9 }
  0xec   :  { %v418_v11 = vpop.f32.mrf.mxu0 }
  0xed   :  { %v149_v12 = vmax.f32 %v146_v10, 0.0 }
  0xef   :  { %428 = vmatmul.mubr.msk.f32.vlgmr.msra.gmra.mxu1 %vm161_vm2, %v149_v12 }
 0x1af   :  { %v231_v18 = vpop.f32.mrf.mxu1 }
 0x1b0   :  { %v232_v19 = vadd.f32 %v396_v17, %v231_v18 }
 0x1b1   :  { %v429_v20 = vpop.f32.mrf.mxu1 }
 0x1b2   :  { %v235_v21 = vmax.f32 %v232_v19, 0.0 }
 0x1b4   :  { %430 = vmatprep.subr.msk.mxu0 %vm161_vm2, %v235_v21 }
 0x1b5   :  { %431 = vmatpush3.xpose.msk.msra.mxu0 %vm161_vm2, %v235_v21 }
 0x1b8   :  { %433 = vmatmul.mubr.msk.f32.vlgmr.msra.gmra.mxu0 %vm161_vm2, %v237_v22 }
 0x278   :  { %v434_v25 = vpop.f32.mrf.mxu0 }
 0x279   :  { %v331_v26 = vadd.f32 %v434_v25, %v248_v24 }
 0x27a   :  { %v325_v27 = vpop.f32.mrf.mxu0 }
 0x27b   :  { %387 = vst.msk [vmem:[%s609_s7 + $0x8] sm:$0xff] %vm385_vm3, %v331_v26  ;;  %v326_v28 = vadd.f32 %v325_v27, %v243_v23 }
 0x27d   :  { %v345_v29 = vand.u32 2147483647, %v326_v28  ;;  %v339_v42 = vmax.f32 %v326_v28, 0.0  ;;  %vm341_vm5 = vcmp.ne.f32.partialorder %v326_v28, %v326_v28 }
 0x27f   :  { %v347_v30 = vsub.f32 0.0, %v345_v29 }
 0x281   :  { %v349_v31 = vmul.f32 1.442695, %v347_v30 }
 0x283   :  { %444 = vpow2.f32 %v349_v31 }
 0x290   :  { %v445_v32 = vpop.eup %444 }
 0x291   :  { %v353_v33 = vadd.f32 1.0, %v445_v32  ;;  %v356_v34 = vmul.f32 -0.5, %v445_v32  ;;  %v359_v37 = vand.u32 2147483647, %v445_v32 }
 0x293   :  { %446 = vlog2.f32 %v353_v33  ;;  %v357_v35 = vadd.f32 1.0, %v356_v34  ;;  %vm360_vm4 = vcmp.lt.f32.partialorder %v359_v37, 0.0004427343 }
 0x294   :  { %448 = vtanh.f32 %v326_v28 }
 0x295   :  { %v358_v40 = vmul.f32 %v445_v32, %v357_v35 }
 0x2a0   :  { %v447_v38 = vpop.eup %446 }
 0x2a1   :  { %v355_v39 = vmul.f32 0.6931472, %v447_v38  ;;  %v449_v47 = vpop.eup %448 }
 0x2a3   :  { %v361_v43 = vsel %vm360_vm4, %v358_v40, %v355_v39 }
 0x2a4   :  { %v371_v44 = vadd.f32 %v361_v43, %v339_v42 }
 0x2a6   :  { %v373_v45 = vsel %vm341_vm5, %v326_v28, %v371_v44 }
 0x2a7   :  { %v375_v46 = vadd.f32 0.001, %v373_v45 }
 0x2a9   :  { %v383_v48 = vsel %vm377_vm6, %v449_v47, %v375_v46 }
 0x2aa   :  { %386 = vst.msk [vmem:[%s609_s7] sm:$0xff] %vm385_vm3, %v383_v48 }
 0x2ab   :  { %392 = vsyncpa [#allocation3], 1 }
 0x2ac   :  { %393 = vsyncpa [#allocation5], 1 }

</bundles_post_ra>
